<compile_context>
chip_gen: v7x
topology: tpu7x:2x2x1
jax: 0.10.0
libtpu: 0.0.40
codegen_flags: <defaults>
</compile_context>

<pallas_src>
import math
import jax
import jax.numpy as jnp
from jax.experimental import pallas as pl
from jax.experimental.pallas import tpu as pltpu

_VMEM_LIMIT_BYTES = 32 * 1024 * 1024   # safe on v5e/v6e/v7x (raises v5e's 16 MiB default)
_VMEM_TILE_BUDGET = 24 * 1024 * 1024   # what the double-buffered row tiles may use
_TARGET_BLOCK_BYTES = 4 * 1024 * 1024  # measured ~85% of HBM roofline at this block size


# ----------------------------- kernels ------------------------------------- #

def _matmul_decay_kernel(d_ref, wt_ref, b_ref, out_ref):
    # d_ref: (tile_n, In)   wt_ref: (In, Out) in d.dtype   b_ref: (1, Out) f32
    z = jnp.dot(d_ref[...], wt_ref[...], preferred_element_type=jnp.float32)
    z = z + b_ref[...]                       # f32 bias, resident block
    out_ref[...] = jnp.exp(-jnp.maximum(z, 0.0)).astype(out_ref.dtype)


def _diag_decay_kernel(d_ref, w_ref, b_ref, out_ref):
    # d_ref: (tile_n, L)   w_ref/b_ref: (1, L) f32   (L = lane-folded width)
    z = d_ref[...].astype(jnp.float32) * w_ref[...] + b_ref[...]
    out_ref[...] = jnp.exp(-jnp.maximum(z, 0.0)).astype(out_ref.dtype)


# ----------------------------- helpers -------------------------------------- #

def _auto_tile_rows(n_rows, row_bytes, resident_bytes=0):
    """Rows per grid step.

    row_bytes:      bytes of one row across the row-tiled operands (in + out).
    resident_bytes: bytes of the constant weight/bias blocks (incl. buffering)
                    that must also live in VMEM.
    """
    avail = max(_VMEM_TILE_BUDGET - resident_bytes, 2 << 20)
    # 2x: row tiles are double-buffered by the pipeline.
    cap = max(8, (avail // (2 * max(row_bytes, 1))) // 8 * 8)
    want = max(8, (_TARGET_BLOCK_BYTES // max(row_bytes, 1)) // 8 * 8)
    tile = min(want, cap)
    if n_rows <= tile:
        return n_rows            # single step: no forced split on single-TC chips
    return tile


def _const_spec(shape, pipeline_mode):
    idx = lambda i: (0, 0)
    if pipeline_mode is None:
        return pl.BlockSpec(shape, idx)
    return pl.BlockSpec(shape, idx, pipeline_mode=pipeline_mode)


def _run_with_single_buffered_consts(build, *args):
    """Try single-buffering the constant (weight/bias) blocks; fall back to the
    default pipeline if this JAX version rejects Buffered(1)."""
    if hasattr(pl, "Buffered"):
        try:
            return build(pl.Buffered(1))(*args)
        except Exception:
            pass
    return build(None)(*args)


# ----------------------------- wrapper -------------------------------------- #

def temporal_decay(d, W, b, *, diag=False, tile_rows=None):
    """Pallas TemporalDecay forward.

    d: [N, input_size], W: [output_size, input_size], b: [output_size]
    returns gamma: [N, output_size]
    """
    N, input_size = d.shape
    output_size = W.shape[0]
    assert W.shape == (output_size, input_size)
    assert b.shape == (output_size,)
    out_dtype = d.dtype
    d_bytes = jnp.dtype(d.dtype).itemsize
    o_bytes = jnp.dtype(out_dtype).itemsize

    compiler_params = pltpu.CompilerParams(
        dimension_semantics=("parallel",),
        vmem_limit_bytes=_VMEM_LIMIT_BYTES,
    )

    if diag:
        assert input_size == output_size
        # d @ (W*I)^T + b == d * diag(W) + b  ->  elementwise kernel
        # (no In^2 weight DMA, no MXU).
        w_diag = jnp.diagonal(W).astype(jnp.float32)
        b_f32 = b.astype(jnp.float32)

        # Lane-fold: present a 128-lane-dense slab when the feature width
        # divides 128 so all loads/stores are full, unmasked vregs.
        fold = 1
        if input_size < 128 and 128 % input_size == 0:
            f = 128 // input_size
            if N % f == 0:
                fold = f
        lane_w = input_size * fold
        rows = N // fold
        d_in = d.reshape(rows, lane_w) if fold > 1 else d
        w_row = jnp.tile(w_diag, fold).reshape(1, lane_w)
        b_row = jnp.tile(b_f32, fold).reshape(1, lane_w)

        resident = 2 * (2 * lane_w * 4)          # two f32 const rows, <=2 buffers
        row_bytes = lane_w * (d_bytes + o_bytes)
        tile = tile_rows if tile_rows is not None else _auto_tile_rows(
            rows, row_bytes, resident)
        grid = (pl.cdiv(rows, tile),)

        def build(const_mode):
            return pl.pallas_call(
                _diag_decay_kernel,
                out_shape=jax.ShapeDtypeStruct((rows, lane_w), out_dtype),
                grid_spec=pltpu.PrefetchScalarGridSpec(
                    num_scalar_prefetch=0,
                    grid=grid,
                    in_specs=[
                        pl.BlockSpec((tile, lane_w), lambda i: (i, 0)),
                        _const_spec((1, lane_w), const_mode),
                        _const_spec((1, lane_w), const_mode),
                    ],
                    out_specs=pl.BlockSpec((tile, lane_w), lambda i: (i, 0)),
                ),
                compiler_params=compiler_params,
            )

        out = _run_with_single_buffered_consts(build, d_in, w_row, b_row)
        return out.reshape(N, input_size) if fold > 1 else out

    # diag=False: MXU path.  W pre-transposed to [In, Out] (natural MXU RHS)
    # and cast to d.dtype so bf16 inputs run a real bf16 matmul; f32
    # accumulation comes from preferred_element_type, bias stays f32.
    w_t = jnp.swapaxes(W, 0, 1).astype(d.dtype)
    b_row = b.astype(jnp.float32).reshape(1, output_size)

    w_bytes = jnp.dtype(w_t.dtype).itemsize
    resident = 2 * (input_size * output_size * w_bytes + output_size * 4)
    row_bytes = input_size * d_bytes + output_size * o_bytes
    tile = tile_rows if tile_rows is not None else _auto_tile_rows(
        N, row_bytes, resident)
    grid = (pl.cdiv(N, tile),)

    # Output written at native width: no lane padding + post-call slice
    # (the slice is an extra HBM round trip that costs more than the masked
    #  store tail it avoids at these shapes).
    def build(const_mode):
        return pl.pallas_call(
            _matmul_decay_kernel,
            out_shape=jax.ShapeDtypeStruct((N, output_size), out_dtype),
            grid_spec=pltpu.PrefetchScalarGridSpec(
                num_scalar_prefetch=0,
                grid=grid,
                in_specs=[
                    pl.BlockSpec((tile, input_size), lambda i: (i, 0)),
                    _const_spec((input_size, output_size), const_mode),
                    _const_spec((1, output_size), const_mode),
                ],
                out_specs=pl.BlockSpec((tile, output_size), lambda i: (i, 0)),
            ),
            compiler_params=compiler_params,
        )

    return _run_with_single_buffered_consts(build, d, w_t, b_row)


def init_temporal_decay_params(key, input_size, output_size):
    """Matches TemporalDecay.reset_parameters: uniform(-stdv, stdv), stdv=1/sqrt(output_size)."""
    stdv = 1.0 / math.sqrt(output_size)
    kw, kb = jax.random.split(key)
    W = jax.random.uniform(kw, (output_size, input_size), jnp.float32, -stdv, stdv)
    b = jax.random.uniform(kb, (output_size,), jnp.float32, -stdv, stdv)
    return W, b


def _reference(d, W, b, diag):
    Weff = W * jnp.eye(W.shape[1], dtype=W.dtype) if diag else W
    return jnp.exp(-jnp.maximum(d @ Weff.T + b[None, :], 0.0))


if __name__ == "__main__":
    key = jax.random.PRNGKey(0)
    k_d, k_p1, k_p2 = jax.random.split(key, 3)

    # Small shapes consistent with BRITS usage: (batch*seq) rows of delta features.
    batch, seq, input_size, hidden = 2, 8, 32, 64
    N = batch * seq
    # deltas are non-negative time gaps
    d = jax.random.uniform(k_d, (N, input_size), jnp.float32, 0.0, 3.0)

    # Case 1: diag=False, input_size -> hidden (temp_decay_h style, MXU path)
    W1, b1 = init_temporal_decay_params(k_p1, input_size, hidden)
    gamma1 = temporal_decay(d, W1, b1, diag=False)
    jax.block_until_ready(gamma1)
    ref1 = _reference(d, W1, b1, diag=False)
    assert gamma1.shape == (N, hidden)
    assert jnp.max(jnp.abs(gamma1 - ref1)) < 1e-5

    # Case 2: diag=True, input_size -> input_size (temp_decay_x style,
    # lane-folded elementwise path: (16,32) -> (4,128))
    W2, b2 = init_temporal_decay_params(k_p2, input_size, input_size)
    gamma2 = temporal_decay(d, W2, b2, diag=True)
    jax.block_until_ready(gamma2)
    ref2 = _reference(d, W2, b2, diag=True)
    assert gamma2.shape == (N, input_size)
    assert jnp.max(jnp.abs(gamma2 - ref2)) < 1e-5

    # Case 3: diag=True with a row count that can't be lane-folded evenly
    # (exercises the native-width fallback path).
    d3 = d[:6]
    gamma3 = temporal_decay(d3, W2, b2, diag=True)
    jax.block_until_ready(gamma3)
    ref3 = _reference(d3, W2, b2, diag=True)
    assert gamma3.shape == (6, input_size)
    assert jnp.max(jnp.abs(gamma3 - ref3)) < 1e-5

    print("KERNEL_OK")
</pallas_src>

<mosaic_0001>
module attributes {stable_mosaic.version = 11 : i64} {
  func.func @_matmul_decay_kernel(%arg0: i32, %arg1: memref<16x32xf32, #tpu.memory_space<vmem>>, %arg2: memref<32x64xf32, #tpu.memory_space<vmem>>, %arg3: memref<1x64xf32, #tpu.memory_space<vmem>>, %arg4: memref<16x64xf32, #tpu.memory_space<vmem>>) attributes {dimension_semantics = [#tpu.dimension_semantics<parallel>], iteration_bounds = array<i64: 1>, scalar_prefetch = 0 : i64, scratch_operands = 0 : i64, tpu.core_type = #tpu.core_type<tc>, window_params = [{transform_indices = @transform_0, window_bounds = array<i64: 16, 32>}, {pipeline_mode = #tpu.pipeline_mode<synchronous>, transform_indices = @transform_1, window_bounds = array<i64: 32, 64>}, {pipeline_mode = #tpu.pipeline_mode<synchronous>, transform_indices = @transform_2, window_bounds = array<i64: 1, 64>}, {transform_indices = @transform_3, window_bounds = array<i64: 16, 64>}]} {
    %c0 = arith.constant 0 : index
    %c0_0 = arith.constant 0 : index
    %0 = vector.load %arg1[%c0, %c0_0] : memref<16x32xf32, #tpu.memory_space<vmem>>, vector<16x32xf32>
    %c0_1 = arith.constant 0 : index
    %c0_2 = arith.constant 0 : index
    %1 = vector.load %arg2[%c0_1, %c0_2] : memref<32x64xf32, #tpu.memory_space<vmem>>, vector<32x64xf32>
    %cst = arith.constant dense<0.000000e+00> : vector<16x64xf32>
    %2 = tpu.matmul %0, %1, %cst {dimension_numbers = #tpu.dot_dimension_numbers<[1], [0], [0], [1], [0, 0, 1, 1], [], []>} : vector<16x32xf32>, vector<32x64xf32>, vector<16x64xf32> -> vector<16x64xf32>
    %c0_3 = arith.constant 0 : index
    %c0_4 = arith.constant 0 : index
    %3 = vector.load %arg3[%c0_3, %c0_4] : memref<1x64xf32, #tpu.memory_space<vmem>>, vector<1x64xf32>
    %4 = vector.broadcast %3 : vector<1x64xf32> to vector<16x64xf32>
    %5 = arith.addf %2, %4 : vector<16x64xf32>
    %cst_5 = arith.constant 0.000000e+00 : f32
    %6 = vector.broadcast %cst_5 : f32 to vector<16x64xf32>
    %7 = arith.maximumf %5, %6 : vector<16x64xf32>
    %cst_6 = arith.constant 0.000000e+00 : f32
    %8 = vector.broadcast %cst_6 : f32 to vector<16x64xf32>
    %9 = arith.subf %8, %7 : vector<16x64xf32>
    %10 = math.exp %9 : vector<16x64xf32>
    %c0_7 = arith.constant 0 : index
    %c0_8 = arith.constant 0 : index
    %11 = vector.load %arg4[%c0_7, %c0_8] : memref<16x64xf32, #tpu.memory_space<vmem>>, vector<16x64xf32>
    tpu.vector_store %arg4[%c0_7, %c0_8], %10 {strides = array<i32>} : memref<16x64xf32, #tpu.memory_space<vmem>>, vector<16x64xf32>,
    return
  }
  func.func @transform_0(%arg0: i32) -> (i32, i32) {
    %c0_i32 = arith.constant 0 : i32
    %c0_i32_0 = arith.constant 0 : i32
    return %arg0, %c0_i32 : i32, i32
  }
  func.func @transform_1(%arg0: i32) -> (i32, i32) {
    %c0_i32 = arith.constant 0 : i32
    %c0_i32_0 = arith.constant 0 : i32
    %c0_i32_1 = arith.constant 0 : i32
    return %c0_i32, %c0_i32_0 : i32, i32
  }
  func.func @transform_2(%arg0: i32) -> (i32, i32) {
    %c0_i32 = arith.constant 0 : i32
    %c0_i32_0 = arith.constant 0 : i32
    %c0_i32_1 = arith.constant 0 : i32
    return %c0_i32, %c0_i32_0 : i32, i32
  }
  func.func @transform_3(%arg0: i32) -> (i32, i32) {
    %c0_i32 = arith.constant 0 : i32
    %c0_i32_0 = arith.constant 0 : i32
    return %arg0, %c0_i32 : i32, i32
  }
}

module attributes {stable_mosaic.version = 11 : i64} {
  func.func @_matmul_decay_kernel(%arg0: i32, %arg1: memref<16x32xf32, #tpu.memory_space<vmem>>, %arg2: memref<32x64xf32, #tpu.memory_space<vmem>>, %arg3: memref<1x64xf32, #tpu.memory_space<vmem>>, %arg4: memref<16x64xf32, #tpu.memory_space<vmem>>) attributes {dimension_semantics = [#tpu.dimension_semantics<parallel>], iteration_bounds = array<i64: 1>, scalar_prefetch = 0 : i64, scratch_operands = 0 : i64, tpu.core_type = #tpu.core_type<tc>, window_params = [{transform_indices = @transform_0, window_bounds = array<i64: 16, 32>}, {pipeline_mode = #tpu.pipeline_mode<synchronous>, transform_indices = @transform_1, window_bounds = array<i64: 32, 64>}, {pipeline_mode = #tpu.pipeline_mode<synchronous>, transform_indices = @transform_2, window_bounds = array<i64: 1, 64>}, {transform_indices = @transform_3, window_bounds = array<i64: 16, 64>}]} {
    %c0 = arith.constant 0 : index
    %c0_0 = arith.constant 0 : index
    %0 = vector.load %arg1[%c0, %c0_0] : memref<16x32xf32, #tpu.memory_space<vmem>>, vector<16x32xf32>
    %c0_1 = arith.constant 0 : index
    %c0_2 = arith.constant 0 : index
    %1 = vector.load %arg2[%c0_1, %c0_2] : memref<32x64xf32, #tpu.memory_space<vmem>>, vector<32x64xf32>
    %cst = arith.constant dense<0.000000e+00> : vector<16x64xf32>
    %2 = tpu.matmul %0, %1, %cst {dimension_numbers = #tpu.dot_dimension_numbers<[1], [0], [0], [1], [0, 0, 1, 1], [], []>} : vector<16x32xf32>, vector<32x64xf32>, vector<16x64xf32> -> vector<16x64xf32>
    %c0_3 = arith.constant 0 : index
    %c0_4 = arith.constant 0 : index
    %3 = vector.load %arg3[%c0_3, %c0_4] : memref<1x64xf32, #tpu.memory_space<vmem>>, vector<1x64xf32>
    %4 = vector.broadcast %3 : vector<1x64xf32> to vector<16x64xf32>
    %5 = arith.addf %2, %4 : vector<16x64xf32>
    %cst_5 = arith.constant 0.000000e+00 : f32
    %6 = vector.broadcast %cst_5 : f32 to vector<16x64xf32>
    %7 = arith.maximumf %5, %6 : vector<16x64xf32>
    %cst_6 = arith.constant 0.000000e+00 : f32
    %8 = vector.broadcast %cst_6 : f32 to vector<16x64xf32>
    %9 = arith.subf %8, %7 : vector<16x64xf32>
    %10 = math.exp %9 : vector<16x64xf32>
    %c0_7 = arith.constant 0 : index
    %c0_8 = arith.constant 0 : index
    %11 = vector.load %arg4[%c0_7, %c0_8] : memref<16x64xf32, #tpu.memory_space<vmem>>, vector<16x64xf32>
    tpu.vector_store %arg4[%c0_7, %c0_8], %10 {strides = array<i32>} : memref<16x64xf32, #tpu.memory_space<vmem>>, vector<16x64xf32>,
    return
  }
  func.func @transform_0(%arg0: i32) -> (i32, i32) {
    %c0_i32 = arith.constant 0 : i32
    %c0_i32_0 = arith.constant 0 : i32
    return %arg0, %c0_i32 : i32, i32
  }
  func.func @transform_1(%arg0: i32) -> (i32, i32) {
    %c0_i32 = arith.constant 0 : i32
    %c0_i32_0 = arith.constant 0 : i32
    %c0_i32_1 = arith.constant 0 : i32
    return %c0_i32, %c0_i32_0 : i32, i32
  }
  func.func @transform_2(%arg0: i32) -> (i32, i32) {
    %c0_i32 = arith.constant 0 : i32
    %c0_i32_0 = arith.constant 0 : i32
    %c0_i32_1 = arith.constant 0 : i32
    return %c0_i32, %c0_i32_0 : i32, i32
  }
  func.func @transform_3(%arg0: i32) -> (i32, i32) {
    %c0_i32 = arith.constant 0 : i32
    %c0_i32_0 = arith.constant 0 : i32
    return %arg0, %c0_i32 : i32, i32
  }
}

</mosaic_0001>

<bundles_post_ra>
// kernel: tpu_custom_call.1
= control target key start
LH: loop header
LB: loop body
LE: loop exit
PB: predicated region body
PF: predicated region fallthrough
CT: control target
= control target key end

     0   :  { %8 = vsyncpa [#allocation3], 0  ;;  %s349_s0 = inlined_call_operand.hbm [shape: f32[16,32], index: 0, kind: input, shape index: {}]   ;;  %s350_s1 = inlined_call_operand.hbm [shape: f32[32,64], index: 1, kind: input, shape index: {}]   ;;  %s351_s2 = inlined_call_operand.vmem [shape: f32[1,64], index: 2, kind: input, shape index: {}]   ;;  %s352_s3 = inlined_call_operand.hbm [shape: f32[16,64], index: 3, kind: output, shape index: {}]  }
   0x1   :  { %9 = vsyncpa [#allocation6], 0 }
   0x2   :  { %10 = vsyncpa [#allocation4], 0  ;;  %s276_s12 = smov [#allocation2]   ;;  %s204_s16 = scalar_lea.hbm %s349_s0, 256 }
   0x3   :  { %s16_s13 = sshll.u32 %s276_s12, 4  ;;  %p205_p0 = scmp.ne.s32.totalorder %s349_s0, %s204_s16  ;;  %s17_s13 = int_to_ptr.vmem [resolvable:$true] %s16_s13 }
   0x4   :  { %p208_p1 = scmp.lt.u32.totalorder %s204_s16, %s349_s0 }
   0x6   :  { %p210_p2 = pnand %p208_p1, %p205_p0 }
   0x8   :  { %213 = shalt.err (!%p210_p2)
}
   0x9   :  { %s214_s21 = scalar_lea.vmem %s17_s13, 256  ;;  %p219_p4 = scmp.lt.s32.totalorder %s17_s13, %s17_s13 }
   0xa   :  { %p215_p3 = scmp.ne.s32.totalorder %s17_s13, %s214_s21  ;;  %p220_p5 = scmp.lt.s32.totalorder %s214_s21, %s214_s21 }
   0xc   :  { %p221_p6 = por %p220_p5, %p219_p4 }
   0xe   :  { %p222_p7 = pnand %p221_p6, %p215_p3 }
  0x10   :  { %225 = shalt.err (!%p222_p7)
}
  0x11   :  { %s277_s22 = smov 128   ;;  %s278_s23 = smov 8  }
  0x12   :  { %22 = dma.hbm_to_vmem [thread:$0]  %s349_s0, 256, %s17_s13, [#allocation3], %s277_s22, %s277_s22, %s278_s23  }
  0x13   :  { %s279_s26 = smov [#allocation5]   ;;  %s226_s30 = scalar_lea.hbm %s350_s1, 512 }
  0x14   :  { %s28_s27 = sshll.u32 %s279_s26, 4  ;;  %p227_p8 = scmp.ne.s32.totalorder %s350_s1, %s226_s30  ;;  %s29_s27 = int_to_ptr.vmem [resolvable:$true] %s28_s27 }
  0x15   :  { %p230_p9 = scmp.lt.u32.totalorder %s226_s30, %s350_s1 }
  0x17   :  { %p232_p10 = pnand %p230_p9, %p227_p8 }
  0x19   :  { %235 = shalt.err (!%p232_p10)
}
  0x1a   :  { %s236_s8 = scalar_lea.vmem %s29_s27, 512  ;;  %p241_p12 = scmp.lt.s32.totalorder %s29_s27, %s29_s27 }
  0x1b   :  { %p237_p11 = scmp.ne.s32.totalorder %s29_s27, %s236_s8  ;;  %p242_p13 = scmp.lt.s32.totalorder %s236_s8, %s236_s8 }
  0x1d   :  { %p243_p0 = por %p242_p13, %p241_p12 }
  0x1f   :  { %p244_p1 = pnand %p243_p0, %p237_p11 }
  0x21   :  { %247 = shalt.err (!%p244_p1)
}
  0x22   :  { %34 = dma.hbm_to_vmem [thread:$0]  %s350_s1, 512, %s29_s27, [#allocation6], %s277_s22, %s277_s22, %s278_s23  }
  0x23   :  { %270 = dma.done.wait [#allocation3], 256  }
  0x24   :  { %271 = vsyncadd [#allocation3], 4294967040 }
  0x25   :  { %272 = dma.done.wait [#allocation6], 512  }
  0x26   :  { %273 = vsyncadd [#allocation6], 4294966784  ;;  %vm56_vm0 = vcmask 261120   ;;  %v45_v0 = vld [vmem:[#allocation5] sm:$0xff]  ;;  %v46_v1 = vld [vmem:[#allocation5 + $0x8] sm:$0xff]  ;;  %s280_s11 = smov [#allocation7]  }
  0x27   :  { %v47_v2 = vld [vmem:[#allocation5 + $0x10] sm:$0xff]  ;;  %v187_v3 = vpack.c.bf16 %v46_v1, %v45_v0  ;;  %v48_v4 = vld [vmem:[#allocation5 + $0x18] sm:$0xff]  ;;  %s154_s12 = sshll.u32 %s280_s11, 4  ;;  %vm146_vm1 = vcmask 523264   ;;  %s155_s12 = int_to_ptr.vmem [resolvable:$true] %s154_s12 }
  0x28   :  { %v43_v5 = vld [vmem:[#allocation2] sm:$0xff]  ;;  %v191_v6 = vpack.c.bf16 %v48_v4, %v47_v2  ;;  %v44_v7 = vld [vmem:[#allocation2 + $0x8] sm:$0xff]  ;;  %p253_p3 = scmp.lt.s32.totalorder %s155_s12, %s155_s12 }
  0x29   :  { %184 = vmatprep.mubr.msk.f32.mxu0 %vm56_vm0, %v43_v5  ;;  %188 = vmatprep.subr.bf16.mxu0 %v187_v3  ;;  %v167_v8 = vld [vmem:[%s351_s2] ss:$0 sm:$0xff]  ;;  %s248_s2 = scalar_lea.vmem %s155_s12, 256 }
  0x2a   :  { %190 = vmatpush3.bf16.msra.mxu0 %v187_v3  ;;  %p249_p2 = scmp.ne.s32.totalorder %s155_s12, %s248_s2  ;;  %p254_p4 = scmp.lt.s32.totalorder %s248_s2, %s248_s2 }
  0x2b   :  { %192 = vmatprep.subr.bf16.mxu0 %v191_v6 }
  0x2c   :  { %p255_p5 = por %p254_p4, %p253_p3 }
  0x2e   :  { %194 = vmatpush3.bf16.msra.mxu0 %v191_v6  ;;  %p256_p6 = pnand %p255_p5, %p249_p2 }
  0x31   :  { %185 = vmatmul.mubr.msk.f32.vlgmr.msra.gmra.mrb[0].mxu0 %vm56_vm0, %v44_v7 }
 0x104   :  { %v186_v9 = vpop.f32.mrb[0].mxu0 }
 0x105   :  { %v135_v10 = vadd.f32 %v186_v9, %v167_v8  ;;  %v129_v11 = vpop.f32.mrb[1].mxu0 }
 0x106   :  { %v130_v12 = vadd.f32 %v167_v8, %v129_v11 }
 0x107   :  { %v139_v13 = vmax.f32 %v135_v10, 0.0 }
 0x108   :  { %v138_v14 = vmax.f32 %v130_v12, 0.0 }
 0x109   :  { %v141_v15 = vsub.f32 0.0, %v139_v13 }
 0x10a   :  { %v140_v16 = vsub.f32 0.0, %v138_v14 }
 0x10b   :  { %v144_v17 = vmul.f32 1.442695, %v141_v15 }
 0x10c   :  { %v142_v18 = vmul.f32 1.442695, %v140_v16 }
 0x10d   :  { %200 = vpow2.f32 %v144_v17 }
 0x10e   :  { %202 = vpow2.f32 %v142_v18 }
 0x117   :  { %v201_v19 = vpop.eup %200 }
 0x118   :  { %v203_v20 = vpop.eup %202  ;;  %148 = vst.msk [vmem:[#allocation7 + $0x8] sm:$0xff] %vm146_vm1, %v201_v19 }
 0x119   :  { %147 = vst.msk [vmem:[#allocation7] sm:$0xff] %vm146_vm1, %v203_v20 }
 0x11a   :  { %259 = shalt.err (!%p256_p6)
}
 0x11b   :  { %s260_s15 = scalar_lea.hbm %s352_s3, 256 }
 0x11c   :  { %p261_p7 = scmp.ne.s32.totalorder %s352_s3, %s260_s15  ;;  %p264_p8 = scmp.lt.u32.totalorder %s260_s15, %s352_s3 }
 0x11e   :  { %p266_p9 = pnand %p264_p8, %p261_p7 }
 0x120   :  { %269 = shalt.err (!%p266_p9)
}
 0x121   :  { %160 = dma.vmem_to_hbm [thread:$0]  %s155_s12, 256, %s352_s3, [#allocation4], %s277_s22, %s277_s22, %s278_s23  }
 0x122   :  { %274 = dma.done.wait [#allocation4], 256  }
 0x123   :  { %275 = vsyncadd [#allocation4], 4294967040 }
 0x124   :  { %164 = vsyncpa [#allocation3], 1 }
 0x125   :  { %165 = vsyncpa [#allocation6], 1 }
 0x126   :  { %166 = vsyncpa [#allocation4], 1 }

// kernel: tpu_custom_call.1
= control target key start
LH: loop header
LB: loop body
LE: loop exit
PB: predicated region body
PF: predicated region fallthrough
CT: control target
= control target key end

     0   :  { %8 = vsyncpa [#allocation3], 0  ;;  %s349_s0 = inlined_call_operand.hbm [shape: f32[16,32], index: 0, kind: input, shape index: {}]   ;;  %s350_s1 = inlined_call_operand.hbm [shape: f32[32,64], index: 1, kind: input, shape index: {}]   ;;  %s351_s2 = inlined_call_operand.vmem [shape: f32[1,64], index: 2, kind: input, shape index: {}]   ;;  %s352_s3 = inlined_call_operand.hbm [shape: f32[16,64], index: 3, kind: output, shape index: {}]  }
   0x1   :  { %9 = vsyncpa [#allocation6], 0 }
   0x2   :  { %10 = vsyncpa [#allocation4], 0  ;;  %s276_s12 = smov [#allocation2]   ;;  %s204_s16 = scalar_lea.hbm %s349_s0, 256 }
   0x3   :  { %s16_s13 = sshll.u32 %s276_s12, 4  ;;  %p205_p0 = scmp.ne.s32.totalorder %s349_s0, %s204_s16  ;;  %s17_s13 = int_to_ptr.vmem [resolvable:$true] %s16_s13 }
   0x4   :  { %p208_p1 = scmp.lt.u32.totalorder %s204_s16, %s349_s0 }
   0x6   :  { %p210_p2 = pnand %p208_p1, %p205_p0 }
   0x8   :  { %213 = shalt.err (!%p210_p2)
}
   0x9   :  { %s214_s21 = scalar_lea.vmem %s17_s13, 256  ;;  %p219_p4 = scmp.lt.s32.totalorder %s17_s13, %s17_s13 }
   0xa   :  { %p215_p3 = scmp.ne.s32.totalorder %s17_s13, %s214_s21  ;;  %p220_p5 = scmp.lt.s32.totalorder %s214_s21, %s214_s21 }
   0xc   :  { %p221_p6 = por %p220_p5, %p219_p4 }
   0xe   :  { %p222_p7 = pnand %p221_p6, %p215_p3 }
  0x10   :  { %225 = shalt.err (!%p222_p7)
}
  0x11   :  { %s277_s22 = smov 128   ;;  %s278_s23 = smov 8  }
  0x12   :  { %22 = dma.hbm_to_vmem [thread:$0]  %s349_s0, 256, %s17_s13, [#allocation3], %s277_s22, %s277_s22, %s278_s23  }
  0x13   :  { %s279_s26 = smov [#allocation5]   ;;  %s226_s30 = scalar_lea.hbm %s350_s1, 512 }
  0x14   :  { %s28_s27 = sshll.u32 %s279_s26, 4  ;;  %p227_p8 = scmp.ne.s32.totalorder %s350_s1, %s226_s30  ;;  %s29_s27 = int_to_ptr.vmem [resolvable:$true] %s28_s27 }
  0x15   :  { %p230_p9 = scmp.lt.u32.totalorder %s226_s30, %s350_s1 }
  0x17   :  { %p232_p10 = pnand %p230_p9, %p227_p8 }
  0x19   :  { %235 = shalt.err (!%p232_p10)
}
  0x1a   :  { %s236_s8 = scalar_lea.vmem %s29_s27, 512  ;;  %p241_p12 = scmp.lt.s32.totalorder %s29_s27, %s29_s27 }
  0x1b   :  { %p237_p11 = scmp.ne.s32.totalorder %s29_s27, %s236_s8  ;;  %p242_p13 = scmp.lt.s32.totalorder %s236_s8, %s236_s8 }
  0x1d   :  { %p243_p0 = por %p242_p13, %p241_p12 }
  0x1f   :  { %p244_p1 = pnand %p243_p0, %p237_p11 }
  0x21   :  { %247 = shalt.err (!%p244_p1)
}
  0x22   :  { %34 = dma.hbm_to_vmem [thread:$0]  %s350_s1, 512, %s29_s27, [#allocation6], %s277_s22, %s277_s22, %s278_s23  }
  0x23   :  { %270 = dma.done.wait [#allocation3], 256  }
  0x24   :  { %271 = vsyncadd [#allocation3], 4294967040 }
  0x25   :  { %272 = dma.done.wait [#allocation6], 512  }
  0x26   :  { %273 = vsyncadd [#allocation6], 4294966784  ;;  %vm56_vm0 = vcmask 261120   ;;  %v45_v0 = vld [vmem:[#allocation5] sm:$0xff]  ;;  %v46_v1 = vld [vmem:[#allocation5 + $0x8] sm:$0xff]  ;;  %s280_s11 = smov [#allocation7]  }
  0x27   :  { %v47_v2 = vld [vmem:[#allocation5 + $0x10] sm:$0xff]  ;;  %v187_v3 = vpack.c.bf16 %v46_v1, %v45_v0  ;;  %v48_v4 = vld [vmem:[#allocation5 + $0x18] sm:$0xff]  ;;  %s154_s12 = sshll.u32 %s280_s11, 4  ;;  %vm146_vm1 = vcmask 523264   ;;  %s155_s12 = int_to_ptr.vmem [resolvable:$true] %s154_s12 }
  0x28   :  { %v43_v5 = vld [vmem:[#allocation2] sm:$0xff]  ;;  %v191_v6 = vpack.c.bf16 %v48_v4, %v47_v2  ;;  %v44_v7 = vld [vmem:[#allocation2 + $0x8] sm:$0xff]  ;;  %p253_p3 = scmp.lt.s32.totalorder %s155_s12, %s155_s12 }
  0x29   :  { %184 = vmatprep.mubr.msk.f32.mxu0 %vm56_vm0, %v43_v5  ;;  %188 = vmatprep.subr.bf16.mxu0 %v187_v3  ;;  %v167_v8 = vld [vmem:[%s351_s2] ss:$0 sm:$0xff]  ;;  %s248_s2 = scalar_lea.vmem %s155_s12, 256 }
  0x2a   :  { %190 = vmatpush3.bf16.msra.mxu0 %v187_v3  ;;  %p249_p2 = scmp.ne.s32.totalorder %s155_s12, %s248_s2  ;;  %p254_p4 = scmp.lt.s32.totalorder %s248_s2, %s248_s2 }
  0x2b   :  { %192 = vmatprep.subr.bf16.mxu0 %v191_v6 }
  0x2c   :  { %p255_p5 = por %p254_p4, %p253_p3 }
  0x2e   :  { %194 = vmatpush3.bf16.msra.mxu0 %v191_v6  ;;  %p256_p6 = pnand %p255_p5, %p249_p2 }
  0x31   :  { %185 = vmatmul.mubr.msk.f32.vlgmr.msra.gmra.mrb[0].mxu0 %vm56_vm0, %v44_v7 }
 0x104   :  { %v186_v9 = vpop.f32.mrb[0].mxu0 }
 0x105   :  { %v135_v10 = vadd.f32 %v186_v9, %v167_v8  ;;  %v129_v11 = vpop.f32.mrb[1].mxu0 }
 0x106   :  { %v130_v12 = vadd.f32 %v167_v8, %v129_v11 }
 0x107   :  { %v139_v13 = vmax.f32 %v135_v10, 0.0 }
 0x108   :  { %v138_v14 = vmax.f32 %v130_v12, 0.0 }
 0x109   :  { %v141_v15 = vsub.f32 0.0, %v139_v13 }
 0x10a   :  { %v140_v16 = vsub.f32 0.0, %v138_v14 }
 0x10b   :  { %v144_v17 = vmul.f32 1.442695, %v141_v15 }
 0x10c   :  { %v142_v18 = vmul.f32 1.442695, %v140_v16 }
 0x10d   :  { %200 = vpow2.f32 %v144_v17 }
 0x10e   :  { %202 = vpow2.f32 %v142_v18 }
 0x117   :  { %v201_v19 = vpop.eup %200 }
 0x118   :  { %v203_v20 = vpop.eup %202  ;;  %148 = vst.msk [vmem:[#allocation7 + $0x8] sm:$0xff] %vm146_vm1, %v201_v19 }
 0x119   :  { %147 = vst.msk [vmem:[#allocation7] sm:$0xff] %vm146_vm1, %v203_v20 }
 0x11a   :  { %259 = shalt.err (!%p256_p6)
}
 0x11b   :  { %s260_s15 = scalar_lea.hbm %s352_s3, 256 }
 0x11c   :  { %p261_p7 = scmp.ne.s32.totalorder %s352_s3, %s260_s15  ;;  %p264_p8 = scmp.lt.u32.totalorder %s260_s15, %s352_s3 }
 0x11e   :  { %p266_p9 = pnand %p264_p8, %p261_p7 }
 0x120   :  { %269 = shalt.err (!%p266_p9)
}
 0x121   :  { %160 = dma.vmem_to_hbm [thread:$0]  %s155_s12, 256, %s352_s3, [#allocation4], %s277_s22, %s277_s22, %s278_s23  }
 0x122   :  { %274 = dma.done.wait [#allocation4], 256  }
 0x123   :  { %275 = vsyncadd [#allocation4], 4294967040 }
 0x124   :  { %164 = vsyncpa [#allocation3], 1 }
 0x125   :  { %165 = vsyncpa [#allocation6], 1 }
 0x126   :  { %166 = vsyncpa [#allocation4], 1 }

</bundles_post_ra>
